<compile_context>
chip_gen: v6e
topology: v6e:2x2x1
jax: 0.10.0
libtpu: 0.0.40
codegen_flags: <defaults>
</compile_context>

<pallas_src>
import numpy as np
import jax
import jax.numpy as jnp
from jax.experimental import pallas as pl
from jax.experimental.pallas import tpu as pltpu


# ----------------------------------------------------------------------------
# Kernel bodies
# ----------------------------------------------------------------------------
def _make_kernel(*, identity_w, single_pass, n_valid, block_n, need_mask):
    """Builds the kernel body for one of four variants.

    Ref signatures (in_refs..., out_refs..., scratch_refs...):
      identity_w, single_pass : (x, o)
      identity_w, online      : (x, o, m, l, acc)
      general W,  single_pass : (x, w_hbm, o, w_vmem)
      general W,  online      : (x, w_hbm, o, w_vmem, m, l, acc)
    """

    def kernel(*refs):
        if identity_w:
            x_ref, o_ref, *scratch = refs
            w_vmem = None
        else:
            x_ref, w_hbm, o_ref, w_vmem, *scratch = refs

        bt, tn, dp = x_ref.shape
        n = None if single_pass else pl.program_id(1)

        # --- single-buffered W: one blocking DMA per batch block (n == 0) ----
        # (megacore-safe: the "arbitrary" n axis starts at 0 on every core).
        if not identity_w:
            if single_pass:
                pltpu.sync_copy(w_hbm, w_vmem)
            else:
                @pl.when(n == 0)
                def _():
                    pltpu.sync_copy(w_hbm, w_vmem)

        x = x_ref[...]
        xf = x.astype(jnp.float32)          # cast once; reused by the weighted sum

        if identity_w:
            logits = xf                     # W == eye -> logits are just x
        else:
            # Fold the Bt batches into the MXU M dimension (tn is always a
            # multiple of the sublane packing, so the reshape is layout-free).
            logits = jnp.dot(
                x.reshape(bt * tn, dp), w_vmem[...],
                preferred_element_type=jnp.float32).reshape(bt, tn, dp)

        if need_mask:
            # Padded sequence rows must not contribute to the softmax.
            off = 0 if single_pass else n * block_n
            rows = jax.lax.broadcasted_iota(jnp.int32, (tn, dp), 0) + off
            logits = jnp.where((rows < n_valid)[None, :, :], logits, -jnp.inf)

        if single_pass:
            # Whole sequence resident: plain softmax, no carry scratch.
            m = jnp.max(logits, axis=1)                         # (Bt, Dp)
            e = jnp.exp(logits - m[:, None, :])                 # (Bt, Tn, Dp)
            l = jnp.sum(e, axis=1)                              # denominator
            acc = jnp.sum(xf * e, axis=1)                       # numerator
            o_ref[...] = (acc * pl.reciprocal(l, approx=False)).astype(o_ref.dtype)
        else:
            m_sc, l_sc, acc_sc = scratch

            @pl.when(n == 0)
            def _():
                m_sc[...] = jnp.full_like(m_sc, -jnp.inf)
                l_sc[...] = jnp.zeros_like(l_sc)
                acc_sc[...] = jnp.zeros_like(acc_sc)

            # Online (flash-style) softmax over the sequence axis.
            # TODO(synk): for very large tiles on v7x, chunk this body over Tn
            # sub-chunks (unrolled fori_loop) to bound the f32 temporaries.
            m_prev = m_sc[...]
            m_new = jnp.maximum(m_prev, jnp.max(logits, axis=1))
            alpha = jnp.exp(m_prev - m_new)
            e = jnp.exp(logits - m_new[:, None, :])
            l_sc[...] = alpha * l_sc[...] + jnp.sum(e, axis=1)
            acc_sc[...] = alpha * acc_sc[...] + jnp.sum(xf * e, axis=1)
            m_sc[...] = m_new

            @pl.when(n == pl.num_programs(1) - 1)
            def _():
                o_ref[...] = (acc_sc[...] *
                              pl.reciprocal(l_sc[...], approx=False)
                              ).astype(o_ref.dtype)

    return kernel


# ----------------------------------------------------------------------------
# Tiling helpers / wrapper
# ----------------------------------------------------------------------------
def _pick_block(total, quantum, max_block):
    """Largest multiple of `quantum` dividing `total` and <= max_block; else the
    full dimension (a full-extent block is always layout-legal)."""
    best = None
    cand = quantum
    while cand <= min(total, max_block):
        if total % cand == 0:
            best = cand
        cand += quantum
    return best if best is not None else total


def _is_identity(w):
    """True iff w is a concrete array equal to eye (the module's init)."""
    try:
        wv = np.asarray(w)
    except Exception:                       # tracer under jit -> can't inspect
        return False
    return (wv.ndim == 2 and wv.shape[0] == wv.shape[1]
            and bool(np.array_equal(wv, np.eye(wv.shape[0]))))


def attention_pool(x, w=None, *, block_b=None, block_n=None,
                   stream_dtype=None, identity_w=None):
    """AttentionPool forward. x: (B, N, D), w: (D, D) or None (= identity).

    Returns (B, D).  (The original module's trailing .squeeze() only changes the
    shape when B == 1; callers can squeeze the result themselves.)
    """
    B, N, D = x.shape
    out_dtype = x.dtype

    if w is None:
        identity_w = True
    else:
        assert w.shape == (D, D)
        if identity_w is None:
            identity_w = _is_identity(w)

    # --- optional bf16 streaming: cast ONCE at the boundary (hoisted W cast);
    #     exp / reductions / accumulators stay f32 inside the kernel. ----------
    if stream_dtype is not None:
        x = x.astype(stream_dtype)
        if not identity_w:
            w = w.astype(stream_dtype)

    itemsize = jnp.dtype(x.dtype).itemsize
    sub_q = {4: 8, 2: 16, 1: 32}.get(itemsize, 8)   # sublane packing quantum

    # --- generation-aware VMEM budget ----------------------------------------
    try:
        vmem_cap = int(pltpu.get_tpu_info().vmem_capacity_bytes)
    except Exception:
        vmem_cap = 64 * 1024 * 1024                  # conservative fallback (v7x)
    vmem_limit = int(min(vmem_cap * 3 // 4, 100 * 1024 * 1024))

    # --- lane-dense feature padding --------------------------------------------
    # Zero-padded W columns -> zero logits -> uniform softmax x zero x -> padded
    # lanes pool to 0 and are sliced off.
    Dp = ((D + 127) // 128) * 128

    # --- sequence padding (+ in-kernel -inf row mask) instead of a giant ragged
    #     un-pipelined block ----------------------------------------------------
    Np = ((N + sub_q - 1) // sub_q) * sub_q
    need_mask = Np != N

    # --- batch padding ----------------------------------------------------------
    if B % 8 != 0 and B > 8:
        Bp = ((B + 7) // 8) * 8     # pad so the batch axis can be tiled/sharded
    else:
        Bp = B                      # small batch: one full-extent block is fine

    pad_b, pad_n, pad_d = Bp - B, Np - N, Dp - D
    if pad_b or pad_n or pad_d:
        x = jnp.pad(x, ((0, pad_b), (0, pad_n), (0, pad_d)))
    if (not identity_w) and pad_d:
        w = jnp.pad(w, ((0, pad_d), (0, pad_d)))

    # --- batch block: keep >= 2 blocks on the parallel axis when possible (v7x
    #     has 2 TensorCores sharding the "parallel" grid dimension). ------------
    if block_b is None:
        if Bp % 8 == 0:
            block_b = _pick_block(Bp, 8, min(32, Bp // 2)) if Bp >= 16 else Bp
        else:
            block_b = Bp
    block_b = min(block_b, Bp)
    if Bp % block_b != 0 or (block_b % 8 != 0 and block_b != Bp):
        block_b = Bp                # keep the output block layout-legal

    w_itemsize = 0 if identity_w else jnp.dtype(w.dtype).itemsize
    w_vmem_bytes = 0 if identity_w else Dp * Dp * w_itemsize

    # --- sequence block: budget = 2x double-buffered x tile + ~3 f32 tile-sized
    #     temporaries (logits, e, x_f32), leaving 40% of the VMEM limit as
    #     headroom for W scratch, accumulators, the output slab and internals. --
    if block_n is None:
        usable = int(vmem_limit * 0.6) - w_vmem_bytes - 3 * block_b * Dp * 4
        bytes_per_row = Dp * (2 * itemsize + 3 * 4)
        rows_total = (max(sub_q * block_b, usable // bytes_per_row)
                      if usable > 0 else sub_q * block_b)
        rows_cap = max(sub_q * block_b, (8 << 20) // max(1, Dp * itemsize))
        max_bn = max(sub_q, min(rows_total, rows_cap) // block_b)
        block_n = Np if Np <= max_bn else _pick_block(Np, sub_q, max_bn)
    else:
        block_n = min(block_n, Np)
        if Np % block_n != 0 or (block_n % sub_q != 0 and block_n != Np):
            block_n = _pick_block(Np, sub_q, block_n)

    single_pass = block_n == Np     # whole sequence in one step: no online carry

    # --- cost estimate ----------------------------------------------------------
    mm_flops = 0 if identity_w else 2 * Bp * Np * Dp * Dp
    cost = pl.CostEstimate(
        flops=mm_flops + 8 * Bp * Np * Dp,
        transcendentals=Bp * Np * Dp + Bp * Dp,
        bytes_accessed=(x.size * itemsize
                        + (0 if identity_w else Dp * Dp * w_itemsize)
                        + Bp * Dp * jnp.dtype(out_dtype).itemsize),
    )

    kernel = _make_kernel(identity_w=identity_w, single_pass=single_pass,
                          n_valid=N, block_n=block_n, need_mask=need_mask)

    if single_pass:
        grid = (Bp // block_b,)
        x_spec = pl.BlockSpec((block_b, Np, Dp), lambda b: (b, 0, 0))
        o_spec = pl.BlockSpec((block_b, Dp), lambda b: (b, 0))
        dims = ("parallel",)
        scratch = []
    else:
        grid = (Bp // block_b, Np // block_n)
        x_spec = pl.BlockSpec((block_b, block_n, Dp), lambda b, n: (b, n, 0))
        o_spec = pl.BlockSpec((block_b, Dp), lambda b, n: (b, 0))
        dims = ("parallel", "arbitrary")
        scratch = [pltpu.VMEM((block_b, Dp), jnp.float32)] * 3   # m / l / acc

    in_specs = [x_spec]
    args = [x]
    if not identity_w:
        # W stays in HBM (no auto double-buffering); DMA'd once per batch block
        # into a single VMEM scratch buffer.
        in_specs.append(pl.BlockSpec(memory_space=pl.ANY))
        args.append(w)
        scratch = [pltpu.VMEM((Dp, Dp), w.dtype)] + scratch

    out = pl.pallas_call(
        kernel,
        out_shape=jax.ShapeDtypeStruct((Bp, Dp), out_dtype),
        grid_spec=pltpu.PrefetchScalarGridSpec(
            num_scalar_prefetch=0,
            grid=grid,
            in_specs=in_specs,
            out_specs=o_spec,
            scratch_shapes=scratch,
        ),
        compiler_params=pltpu.CompilerParams(
            dimension_semantics=dims,
            vmem_limit_bytes=vmem_limit,
        ),
        cost_estimate=cost,
    )(*args)

    if pad_b or pad_d:
        out = out[:B, :D]
    return out


# ----------------------------------------------------------------------------
# References & self-test
# ----------------------------------------------------------------------------
def attention_pool_ref(x, w):
    logits = jnp.einsum('bnd,de->bne', x, w)
    attn = jax.nn.softmax(logits, axis=1)
    return jnp.sum(x * attn, axis=1)


def attention_pool_ref_identity(x):
    attn = jax.nn.softmax(x, axis=1)          # matmul-free exact f32 reference
    return jnp.sum(x * attn, axis=1)


if __name__ == "__main__":
    key = jax.random.PRNGKey(0)
    kx, kw = jax.random.split(key)

    # Shapes implied by the module: x is (batch, seq, dim).
    B, N, D = 2, 8, 32
    x = jax.random.normal(kx, (B, N, D), dtype=jnp.float32)
    w_eye = jnp.eye(D, dtype=jnp.float32)                       # module init
    w_rand = jax.random.normal(kw, (D, D), dtype=jnp.float32) * 0.3

    checks = []

    # 1) identity-W fast path (the module's default parameter), single-pass.
    #    Matmul-free on both sides -> tight f32 tolerance.
    out1 = jax.block_until_ready(attention_pool(x, w_eye))
    checks.append(("identity", out1, attention_pool_ref_identity(x), 1e-5, 1e-5))

    # 2) general learned W: MXU matmul + single-buffered W DMA, single-pass.
    #    Tolerance covers default-precision MXU rounding differences between the
    #    fused kernel matmul and the XLA reference einsum (not a kernel bug).
    out2 = jax.block_until_ready(attention_pool(x, w_rand))
    checks.append(("general", out2, attention_pool_ref(x, w_rand), 2e-2, 2e-2))

    # 3) ragged N + forced small block_n: online (flash-style) softmax with the
    #    padded-row -inf mask and the m/l/acc scratch carry.
    x3 = jax.random.normal(kx, (B, 20, D), dtype=jnp.float32)
    out3 = jax.block_until_ready(attention_pool(x3, w_rand, block_n=8))
    checks.append(("online", out3, attention_pool_ref(x3, w_rand), 2e-2, 2e-2))

    # 4) bf16 HBM streaming (hoisted boundary casts); exp/reductions stay f32.
    out4 = jax.block_until_ready(
        attention_pool(x, w_rand, stream_dtype=jnp.bfloat16))
    checks.append(("bf16", out4, attention_pool_ref(x, w_rand), 5e-2, 5e-2))

    for name, got, want, rtol, atol in checks:
        np.testing.assert_allclose(np.asarray(got), np.asarray(want),
                                   rtol=rtol, atol=atol, err_msg=name)
    print("KERNEL_OK")
</pallas_src>

<mosaic_0001>
module attributes {stable_mosaic.version = 11 : i64} {
  func.func @kernel(%arg0: i32, %arg1: memref<2x8x128xf32, #tpu.memory_space<vmem>>, %arg2: memref<2x128xf32, #tpu.memory_space<vmem>>) attributes {dimension_semantics = [#tpu.dimension_semantics<parallel>], iteration_bounds = array<i64: 1>, scalar_prefetch = 0 : i64, scratch_operands = 0 : i64, tpu.core_type = #tpu.core_type<tc>, window_params = [{transform_indices = @transform_0, window_bounds = array<i64: 2, 8, 128>}, {transform_indices = @transform_1, window_bounds = array<i64: 2, 128>}]} {
    %c0 = arith.constant 0 : index
    %c0_0 = arith.constant 0 : index
    %c0_1 = arith.constant 0 : index
    %0 = vector.load %arg1[%c0, %c0_0, %c0_1] : memref<2x8x128xf32, #tpu.memory_space<vmem>>, vector<2x8x128xf32>
    %cst = arith.constant dense<0xFF800000> : vector<2x128xf32>
    %1 = vector.multi_reduction <maximumf>, %0, %cst [1] : vector<2x8x128xf32> to vector<2x128xf32>
    %2 = vector.shape_cast %1 : vector<2x128xf32> to vector<2x1x128xf32>
    %3 = vector.broadcast %2 : vector<2x1x128xf32> to vector<2x8x128xf32>
    %4 = arith.subf %0, %3 : vector<2x8x128xf32>
    %5 = math.exp %4 : vector<2x8x128xf32>
    %cst_2 = arith.constant dense<0.000000e+00> : vector<2x128xf32>
    %6 = vector.multi_reduction <add>, %5, %cst_2 [1] : vector<2x8x128xf32> to vector<2x128xf32>
    %7 = arith.mulf %0, %5 : vector<2x8x128xf32>
    %cst_3 = arith.constant dense<0.000000e+00> : vector<2x128xf32>
    %8 = vector.multi_reduction <add>, %7, %cst_3 [1] : vector<2x8x128xf32> to vector<2x128xf32>
    %9 = tpu.reciprocal %6 : vector<2x128xf32> -> vector<2x128xf32>
    %10 = arith.mulf %8, %9 : vector<2x128xf32>
    %c0_4 = arith.constant 0 : index
    %c0_5 = arith.constant 0 : index
    %11 = vector.load %arg2[%c0_4, %c0_5] : memref<2x128xf32, #tpu.memory_space<vmem>>, vector<2x128xf32>
    tpu.vector_store %arg2[%c0_4, %c0_5], %10 {strides = array<i32>} : memref<2x128xf32, #tpu.memory_space<vmem>>, vector<2x128xf32>,
    return
  }
  func.func @transform_0(%arg0: i32) -> (i32, i32, i32) {
    %c0_i32 = arith.constant 0 : i32
    %c0_i32_0 = arith.constant 0 : i32
    %c0_i32_1 = arith.constant 0 : i32
    return %arg0, %c0_i32, %c0_i32_0 : i32, i32, i32
  }
  func.func @transform_1(%arg0: i32) -> (i32, i32) {
    %c0_i32 = arith.constant 0 : i32
    %c0_i32_0 = arith.constant 0 : i32
    return %arg0, %c0_i32 : i32, i32
  }
}

</mosaic_0001>

<bundles_post_ra>
// kernel: tpu_custom_call.1
= control target key start
LH: loop header
LB: loop body
LE: loop exit
PB: predicated region body
PF: predicated region fallthrough
CT: control target
= control target key end

     0   :  { %6 = vsyncpa [#allocation3], 0  ;;  %s170_s0 = inlined_call_operand.hbm [shape: f32[2,8,128], index: 0, kind: input, shape index: {}]   ;;  %s171_s1 = inlined_call_operand.hbm [shape: f32[2,128], index: 1, kind: output, shape index: {}]  }
   0x1   :  { %7 = vsyncpa [#allocation4], 0  ;;  %s150_s6 = smov [#allocation2]  }
   0x2   :  { %s13_s7 = sshll.u32 %s150_s6, 4  ;;  %s14_s7 = int_to_ptr.vmem [resolvable:$true] %s13_s7 }
   0x3   :  { %s114_s8 = scalar_lea.vmem %s14_s7, 256  ;;  %p119_p1 = scmp.lt.s32.totalorder %s14_s7, %s14_s7 }
   0x4   :  { %p115_p0 = scmp.ne.s32.totalorder %s14_s7, %s114_s8  ;;  %p120_p2 = scmp.lt.s32.totalorder %s114_s8, %s114_s8 }
   0x6   :  { %p121_p3 = por %p120_p2, %p119_p1 }
   0x8   :  { %p122_p4 = pnand %p121_p3, %p115_p0 }
   0xa   :  { %125 = shalt.err (!%p122_p4)
}
   0xb   :  { %s151_s9 = smov 128   ;;  %s152_s10 = smov 8  }
   0xc   :  { %19 = dma.hbm_to_vmem [thread:$0]  %s170_s0, 256, %s14_s7, [#allocation3], %s151_s9, %s151_s9, %s152_s10  }
   0xd   :  { %146 = dma.done.wait [#allocation3], 256  }
   0xe   :  { %147 = vsyncadd [#allocation3], 4294967040  ;;  %v23_v0 = vld [vmem:[#allocation2] sm:$0xff]  ;;  %v24_v1 = vld [vmem:[#allocation2 + $0x8] sm:$0xff]  ;;  %s153_s0 = smov [#allocation5]   ;;  %vm75_vm0 = vcmask 1041409  }
   0xf   :  { %v25_v2 = vrot.slane %v23_v0, 4  ;;  %v31_v3 = vrot.slane %v24_v1, 4  ;;  %s85_s13 = sshll.u32 %s153_s0, 4  ;;  %s86_s13 = int_to_ptr.vmem [resolvable:$true] %s85_s13 }
  0x10   :  { %s126_s14 = scalar_lea.vmem %s86_s13, 32  ;;  %p131_p6 = scmp.lt.s32.totalorder %s86_s13, %s86_s13 }
  0x11   :  { %v26_v4 = vmax.f32 %v23_v0, %v25_v2  ;;  %v32_v5 = vmax.f32 %v24_v1, %v31_v3  ;;  %p127_p5 = scmp.ne.s32.totalorder %s86_s13, %s126_s14  ;;  %p132_p7 = scmp.lt.s32.totalorder %s126_s14, %s126_s14 }
  0x13   :  { %v27_v6 = vrot.slane %v26_v4, 2  ;;  %v33_v7 = vrot.slane %v32_v5, 2  ;;  %p133_p8 = por %p132_p7, %p131_p6 }
  0x15   :  { %v28_v8 = vmax.f32 %v26_v4, %v27_v6  ;;  %v34_v9 = vmax.f32 %v32_v5, %v33_v7  ;;  %p134_p9 = pnand %p133_p8, %p127_p5 }
  0x17   :  { %v29_v10 = vrot.slane %v28_v8, 1  ;;  %v35_v11 = vrot.slane %v34_v9, 1 }
  0x19   :  { %v30_v12 = vmax.f32 %v28_v8, %v29_v10  ;;  %v36_v13 = vmax.f32 %v34_v9, %v35_v11 }
  0x1b   :  { %v37_v14 = vsub.f32 %v23_v0, %v30_v12  ;;  %v38_v15 = vsub.f32 %v24_v1, %v36_v13 }
  0x1d   :  { %v39_v16 = vmul.f32 1.442695, %v37_v14  ;;  %v41_v17 = vmul.f32 1.442695, %v38_v15 }
  0x1f   :  { %98 = vpow2.f32 %v39_v16 }
  0x20   :  { %100 = vpow2.f32 %v41_v17 }
  0x2c   :  { %v99_v18 = vpop.eup %98 }
  0x2d   :  { %v101_v19 = vpop.eup %100  ;;  %v43_v20 = vrot.slane %v99_v18, 4  ;;  %v55_v21 = vmul.f32 %v99_v18, %v23_v0 }
  0x2e   :  { %v49_v22 = vrot.slane %v101_v19, 4  ;;  %v56_v23 = vmul.f32 %v101_v19, %v24_v1 }
  0x2f   :  { %v44_v24 = vadd.f32 %v99_v18, %v43_v20  ;;  %v57_v25 = vrot.slane %v55_v21, 4 }
  0x30   :  { %v50_v26 = vadd.f32 %v101_v19, %v49_v22  ;;  %v63_v27 = vrot.slane %v56_v23, 4 }
  0x31   :  { %v45_v28 = vrot.slane %v44_v24, 2  ;;  %v58_v31 = vadd.f32 %v57_v25, %v55_v21 }
  0x32   :  { %v51_v29 = vrot.slane %v50_v26, 2  ;;  %v64_v33 = vadd.f32 %v63_v27, %v56_v23 }
  0x33   :  { %v46_v30 = vadd.f32 %v45_v28, %v44_v24  ;;  %v59_v37 = vrot.slane %v58_v31, 2 }
  0x34   :  { %v52_v32 = vadd.f32 %v51_v29, %v50_v26  ;;  %v65_v39 = vrot.slane %v64_v33, 2 }
  0x35   :  { %v47_v34 = vrot.slane %v46_v30, 1  ;;  %v60_v40 = vadd.f32 %v59_v37, %v58_v31 }
  0x36   :  { %v53_v35 = vrot.slane %v52_v32, 1  ;;  %v66_v41 = vadd.f32 %v65_v39, %v64_v33 }
  0x37   :  { %v48_v36 = vadd.f32 %v47_v34, %v46_v30  ;;  %v61_v42 = vrot.slane %v60_v40, 1 }
  0x38   :  { %v54_v38 = vadd.f32 %v53_v35, %v52_v32  ;;  %v67_v43 = vrot.slane %v66_v41, 1 }
  0x39   :  { %102 = vrcp.f32 %v48_v36  ;;  %v62_v44 = vadd.f32 %v61_v42, %v60_v40 }
  0x3a   :  { %104 = vrcp.f32 %v54_v38  ;;  %v68_v45 = vadd.f32 %v67_v43, %v66_v41 }
  0x46   :  { %v103_v46 = vpop.eup %102 }
  0x47   :  { %v105_v47 = vpop.eup %104  ;;  %v71_v48 = vmul.f32 %v103_v46, %v62_v44 }
  0x48   :  { %v72_v49 = vmul.f32 %v105_v47, %v68_v45 }
  0x4a   :  { %v76_v50 = vsel %vm75_vm0, %v72_v49, %v71_v48 }
  0x4b   :  { %78 = vst [vmem:[#allocation5] sm:$0x3] %v76_v50 }
  0x4c   :  { %137 = shalt.err (!%p134_p9)
}
  0x4d   :  { %88 = dma.vmem_to_hbm [thread:$0]  %s86_s13, 32, %s171_s1, [#allocation4]  }
  0x4e   :  { %148 = dma.done.wait [#allocation4], 32  }
  0x4f   :  { %149 = vsyncadd [#allocation4], 4294967264 }
  0x50   :  { %92 = vsyncpa [#allocation3], 1 }
  0x51   :  { %93 = vsyncpa [#allocation4], 1 }

</bundles_post_ra>
